<compile_context>
chip_gen: v6e
topology: v6e:2x2x1
jax: 0.10.0
libtpu: 0.0.40
codegen_flags: <defaults>
</compile_context>

<pallas_src>
import itertools

import numpy as np
import jax
import jax.numpy as jnp
from jax.experimental import pallas as pl
from jax.experimental.pallas import tpu as pltpu

# ----- hyper-parameters (args.* in the PyTorch module, DETR defaults) -----
NUM_CLASS = 4
CLASS_COST = 1.0
BBOX_COST = 5.0
GIOU_COST = 2.0
EOS_COST = 0.1

LANE = 128                      # lane-padding target for class / target dims
NEG_INF_LOGIT = -1e9            # finite "minus infinity" for padded classes


def _cxcywh_to_xyxy(cx, cy, w, h):
    return cx - 0.5 * w, cy - 0.5 * h, cx + 0.5 * w, cy + 0.5 * h


# --------------------------------------------------------------------------
# Kernel 1: Hungarian matcher cost matrix, ALL heads*batches in one invocation
# --------------------------------------------------------------------------
def _matcher_cost_kernel(logits_ref, pbox_ref, toh_ref, tboxT_ref, cost_ref):
    logits = logits_ref[...]                                  # (HB, Q, CPAD)
    m = jnp.max(logits, axis=-1, keepdims=True)
    e = jnp.exp(logits - m)
    prob = e * pl.reciprocal(jnp.sum(e, axis=-1, keepdims=True), approx=True)

    oh_T = toh_ref[...]                                       # (HB, CPAD, TPAD)
    # -prob[b, q, label_t] for every (q, t): one batched MXU matmul
    cost_class = -jnp.einsum('bqc,bct->bqt', prob, oh_T,
                             preferred_element_type=jnp.float32)

    pb = pbox_ref[...]                                        # (HB, Q, 4) cxcywh
    tbT = tboxT_ref[...]                                      # (HB, 4, TPAD)
    pcx, pcy, pw, ph = (pb[:, :, 0:1], pb[:, :, 1:2],
                        pb[:, :, 2:3], pb[:, :, 3:4])         # (HB, Q, 1)
    tcx, tcy, tw, th = (tbT[:, 0:1, :], tbT[:, 1:2, :],
                        tbT[:, 2:3, :], tbT[:, 3:4, :])       # (HB, 1, TPAD)

    cost_bbox = (jnp.abs(pcx - tcx) + jnp.abs(pcy - tcy)
                 + jnp.abs(pw - tw) + jnp.abs(ph - th))       # (HB, Q, TPAD)

    px1, py1, px2, py2 = _cxcywh_to_xyxy(pcx, pcy, pw, ph)
    tx1, ty1, tx2, ty2 = _cxcywh_to_xyxy(tcx, tcy, tw, th)
    ix1 = jnp.maximum(px1, tx1); iy1 = jnp.maximum(py1, ty1)
    ix2 = jnp.minimum(px2, tx2); iy2 = jnp.minimum(py2, ty2)
    inter = jnp.maximum(ix2 - ix1, 0.0) * jnp.maximum(iy2 - iy1, 0.0)
    area_p = (px2 - px1) * (py2 - py1)
    area_t = (tx2 - tx1) * (ty2 - ty1)
    union = area_p + area_t - inter
    iou = inter * pl.reciprocal(jnp.maximum(union, 1e-9), approx=True)
    ex1 = jnp.minimum(px1, tx1); ey1 = jnp.minimum(py1, ty1)
    ex2 = jnp.maximum(px2, tx2); ey2 = jnp.maximum(py2, ty2)
    area_e = (ex2 - ex1) * (ey2 - ey1)
    giou = iou - (area_e - union) * pl.reciprocal(
        jnp.maximum(area_e, 1e-9), approx=True)

    cost_ref[...] = (CLASS_COST * cost_class + BBOX_COST * cost_bbox
                     + GIOU_COST * (-giou))


def matcher_cost(logits_p, pboxes, tgt_oh_T_p, tgt_boxes_T_p):
    HB, Q, _ = logits_p.shape
    TPAD = tgt_boxes_T_p.shape[-1]
    vmem = pl.BlockSpec(memory_space=pltpu.MemorySpace.VMEM)
    return pl.pallas_call(
        _matcher_cost_kernel,
        out_shape=jax.ShapeDtypeStruct((HB, Q, TPAD), jnp.float32),
        in_specs=[vmem] * 4,
        out_specs=vmem,
    )(logits_p, pboxes, tgt_oh_T_p, tgt_boxes_T_p)


# --------------------------------------------------------------------------
# Kernel 2: per-head classification / bbox-L1 / gIoU losses (grid over heads)
# --------------------------------------------------------------------------
def _loss_kernel(logits_ref, toh_ref, w_ref, pb_ref, tb_ref, mask_ref, out_ref):
    # weighted cross-entropy (F.cross_entropy w/ weight, reduction='mean')
    logits = logits_ref[...]                                  # (B, Q, CPAD)
    m = jnp.max(logits, axis=-1, keepdims=True)
    lse = m + jnp.log(jnp.sum(jnp.exp(logits - m), axis=-1, keepdims=True))
    logp = logits - lse
    toh = toh_ref[...]                                        # (B, Q, CPAD)
    wvec = w_ref[...]                                         # (1, 1, CPAD)
    nll = -jnp.sum(toh * logp, axis=-1)                       # (B, Q)
    w_per = jnp.sum(toh * wvec, axis=-1)                      # (B, Q)
    cls_l = (CLASS_COST * jnp.sum(w_per * nll, keepdims=True)
             / jnp.sum(w_per, keepdims=True))                 # (1, 1)

    # masked L1 box loss over this head's matched pairs
    pb = pb_ref[0]                                            # (MPAD, 4)
    tb = tb_ref[0]
    mask = mask_ref[0]                                        # (MPAD, 1)
    num_boxes = jnp.sum(mask, keepdims=True) + 1e-6           # (1, 1)
    l1 = jnp.sum(jnp.abs(pb - tb), axis=-1, keepdims=True)    # (MPAD, 1)
    bbox_l = BBOX_COST * jnp.sum(l1 * mask, keepdims=True) / num_boxes

    # diagonal gIoU loss (masked rows get safe denominators — no NaN poisoning)
    px1, py1, px2, py2 = _cxcywh_to_xyxy(pb[:, 0:1], pb[:, 1:2],
                                         pb[:, 2:3], pb[:, 3:4])
    tx1, ty1, tx2, ty2 = _cxcywh_to_xyxy(tb[:, 0:1], tb[:, 1:2],
                                         tb[:, 2:3], tb[:, 3:4])
    ix1 = jnp.maximum(px1, tx1); iy1 = jnp.maximum(py1, ty1)
    ix2 = jnp.minimum(px2, tx2); iy2 = jnp.minimum(py2, ty2)
    inter = jnp.maximum(ix2 - ix1, 0.0) * jnp.maximum(iy2 - iy1, 0.0)
    area_p = (px2 - px1) * (py2 - py1)
    area_t = (tx2 - tx1) * (ty2 - ty1)
    union = area_p + area_t - inter
    valid = mask > 0.0
    iou = inter / jnp.where(valid, union, 1.0)
    ex1 = jnp.minimum(px1, tx1); ey1 = jnp.minimum(py1, ty1)
    ex2 = jnp.maximum(px2, tx2); ey2 = jnp.maximum(py2, ty2)
    area_e = (ex2 - ex1) * (ey2 - ey1)
    giou = iou - (area_e - union) / jnp.where(valid, area_e, 1.0)
    giou_l = GIOU_COST * jnp.sum((1.0 - giou) * mask, keepdims=True) / num_boxes

    # single lane-dense output tile: lanes 0/1/2 hold cls/bbox/giou
    lane = jax.lax.broadcasted_iota(jnp.int32, (8, LANE), 1)
    out_ref[0] = jnp.where(lane == 0, cls_l,
                 jnp.where(lane == 1, bbox_l,
                 jnp.where(lane == 2, giou_l, 0.0)))


def detr_losses(logits_p, target_oh_p, weight_p, m_pred, m_tgt, mask,
                num_heads, batch):
    HB, Q, CPAD = logits_p.shape
    H, B = num_heads, batch
    MPAD = m_pred.shape[1]
    return pl.pallas_call(
        _loss_kernel,
        out_shape=jax.ShapeDtypeStruct((H, 8, LANE), jnp.float32),
        grid=(H,),
        in_specs=[
            pl.BlockSpec((B, Q, CPAD), lambda h: (h, 0, 0)),
            pl.BlockSpec((B, Q, CPAD), lambda h: (h, 0, 0)),
            pl.BlockSpec((1, 1, CPAD), lambda h: (0, 0, 0)),
            pl.BlockSpec((1, MPAD, 4), lambda h: (h, 0, 0)),
            pl.BlockSpec((1, MPAD, 4), lambda h: (h, 0, 0)),
            pl.BlockSpec((1, MPAD, 1), lambda h: (h, 0, 0)),
        ],
        out_specs=pl.BlockSpec((1, 8, LANE), lambda h: (h, 0, 0)),
        compiler_params=pltpu.CompilerParams(
            dimension_semantics=("parallel",)),
    )(logits_p, target_oh_p, weight_p, m_pred, m_tgt, mask)


# --------------------------------------------------------------------------
# Host-side matcher assignment + glue (getPermutationIdx, gathers)
# --------------------------------------------------------------------------
def _exact_assignment(cost_np):
    # TODO(synk): scipy.optimize.linear_sum_assignment (Hungarian) has no Pallas
    # equivalent; exact brute-force over injective mappings is used (tiny Q, T).
    Q, T = cost_np.shape
    best_c, best_rows = None, None
    cols = list(range(T))
    for rows in itertools.permutations(range(Q), T):
        c = cost_np[list(rows), cols].sum()
        if best_c is None or c < best_c:
            best_c, best_rows = c, rows
    src = np.asarray(best_rows, dtype=np.int64)
    tgt = np.arange(T, dtype=np.int64)
    order = np.argsort(src)
    return src[order], tgt[order]


def compute_losses_stacked(all_class, all_bbox, tgt_labels, tgt_boxes,
                           empty_weight):
    """all_class (H,B,Q,C+1), all_bbox (H,B,Q,4) — H = 1 main + aux heads."""
    H, B, Q, C1 = all_class.shape
    T = int(tgt_labels.shape[1])
    HB = H * B
    CPAD = -(-C1 // LANE) * LANE
    TPAD = -(-T // LANE) * LANE

    # --- matcher inputs: flatten heads into the batch dim, lane-pad ---
    logits_f = all_class.reshape(HB, Q, C1)
    pbox_f = all_bbox.reshape(HB, Q, 4)
    logits_p = jnp.pad(logits_f, ((0, 0), (0, 0), (0, CPAD - C1)),
                       constant_values=NEG_INF_LOGIT)

    tl = jnp.tile(tgt_labels, (H, 1))                          # (HB, T)
    tgt_oh_T = jnp.transpose(
        jax.nn.one_hot(tl, C1, dtype=jnp.float32), (0, 2, 1))  # (HB, C1, T)
    tgt_oh_T_p = jnp.pad(tgt_oh_T, ((0, 0), (0, CPAD - C1), (0, TPAD - T)))

    tb_T = jnp.transpose(jnp.tile(tgt_boxes, (H, 1, 1)), (0, 2, 1))  # (HB,4,T)
    pad_box = jnp.broadcast_to(
        jnp.array([0.5, 0.5, 1.0, 1.0], jnp.float32).reshape(1, 4, 1),
        (HB, 4, TPAD - T))
    tb_T_p = jnp.concatenate([tb_T, pad_box], axis=-1)          # (HB, 4, TPAD)

    # one Pallas call + one blocking host sync for ALL heads
    cost = matcher_cost(logits_p, pbox_f, tgt_oh_T_p, tb_T_p)   # (HB, Q, TPAD)
    cost_np = np.asarray(jax.device_get(cost))[:, :, :T]
    indices = [_exact_assignment(cost_np[i]) for i in range(HB)]

    # --- build CE targets & matched box lists (tiny, host side) ---
    tl_np = np.asarray(jax.device_get(tgt_labels))
    tb_np = np.asarray(jax.device_get(tgt_boxes))
    pb_np = np.asarray(jax.device_get(all_bbox))

    M = B * T
    MPAD = -(-M // 8) * 8
    target_class = np.full((HB, Q), NUM_CLASS, dtype=np.int32)
    m_pred = np.tile(np.array([0.5, 0.5, 1.0, 1.0], np.float32), (H, MPAD, 1))
    m_tgt = m_pred.copy()
    m_mask = np.zeros((H, MPAD, 1), np.float32)
    for h in range(H):
        row = 0
        for b in range(B):
            src, tgt = indices[h * B + b]
            lab = tl_np[b][tgt]
            target_class[h * B + b, src] = lab
            for j in range(len(src)):
                m_pred[h, row] = pb_np[h, b, src[j]]
                m_tgt[h, row] = tb_np[b, tgt[j]]
                m_mask[h, row, 0] = 1.0 if lab[j] != NUM_CLASS else 0.0
                row += 1

    target_oh_p = jax.nn.one_hot(jnp.asarray(target_class), CPAD,
                                 dtype=jnp.float32)             # (HB, Q, CPAD)
    weight_p = jnp.pad(empty_weight, (0, CPAD - C1)).reshape(1, 1, CPAD)

    out = detr_losses(logits_p, target_oh_p, weight_p,
                      jnp.asarray(m_pred), jnp.asarray(m_tgt),
                      jnp.asarray(m_mask), H, B)                # (H, 8, LANE)
    cls_l, bbox_l, giou_l = out[:, 0, 0], out[:, 0, 1], out[:, 0, 2]
    return cls_l, bbox_l, giou_l, indices


def base_criterion_forward(x, y, empty_weight):
    heads = [(x['class'], x['bbox'])] + [(a['class'], a['bbox'])
                                         for a in x.get('aux', [])]
    all_class = jnp.stack([h[0] for h in heads], axis=0)
    all_bbox = jnp.stack([h[1] for h in heads], axis=0)
    cls_l, bbox_l, giou_l, _ = compute_losses_stacked(
        all_class, all_bbox, y['labels'], y['boxes'], empty_weight)
    ans = {'classification loss': cls_l[0].reshape(()),
           'bbox loss': bbox_l[0].reshape(()),
           'gIoU loss': giou_l[0].reshape(())}
    for i in range(1, len(heads)):
        ans[f'classification loss_aux{i - 1}'] = cls_l[i].reshape(())
        ans[f'bbox loss_aux{i - 1}'] = bbox_l[i].reshape(())
        ans[f'gIoU loss_aux{i - 1}'] = giou_l[i].reshape(())
    return ans


# --------------------------------------------------------------------------
# numpy reference (correctness sanity check of the loss kernel)
# --------------------------------------------------------------------------
def _reference_losses(pred_class, pred_bbox, tgt_labels, tgt_boxes, indices,
                      empty_weight):
    pc = np.asarray(pred_class); pb = np.asarray(pred_bbox)
    tl = np.asarray(tgt_labels); tb = np.asarray(tgt_boxes)
    w = np.asarray(empty_weight)
    B, Q, C1 = pc.shape
    batch_idx = np.concatenate([np.full_like(s, b) for b, (s, _) in enumerate(indices)])
    src_idx = np.concatenate([s for s, _ in indices])
    tgt_idx = np.concatenate([t for _, t in indices])
    tco = np.concatenate([tl[b][t] for b, (_, t) in enumerate(indices)])
    tc = np.full((B, Q), NUM_CLASS, dtype=np.int64)
    tc[batch_idx, src_idx] = tco
    m = pc.max(-1, keepdims=True)
    logp = pc - m - np.log(np.exp(pc - m).sum(-1, keepdims=True))
    nll = -np.take_along_axis(logp, tc[..., None], -1)[..., 0]
    wper = w[tc]
    cls = CLASS_COST * (wper * nll).sum() / wper.sum()
    msk = tco != NUM_CLASS
    boxes = pb[batch_idx, src_idx][msk]
    tboxes = tb[batch_idx, tgt_idx][msk]
    nb = len(tboxes) + 1e-6
    bbox = BBOX_COST * np.abs(boxes - tboxes).sum() / nb

    def xyxy(b):
        return np.stack([b[:, 0] - b[:, 2] / 2, b[:, 1] - b[:, 3] / 2,
                         b[:, 0] + b[:, 2] / 2, b[:, 1] + b[:, 3] / 2], -1)
    a, c = xyxy(boxes), xyxy(tboxes)
    ix1 = np.maximum(a[:, 0], c[:, 0]); iy1 = np.maximum(a[:, 1], c[:, 1])
    ix2 = np.minimum(a[:, 2], c[:, 2]); iy2 = np.minimum(a[:, 3], c[:, 3])
    inter = np.clip(ix2 - ix1, 0, None) * np.clip(iy2 - iy1, 0, None)
    ar_a = (a[:, 2] - a[:, 0]) * (a[:, 3] - a[:, 1])
    ar_c = (c[:, 2] - c[:, 0]) * (c[:, 3] - c[:, 1])
    union = ar_a + ar_c - inter
    iou = inter / union
    ex1 = np.minimum(a[:, 0], c[:, 0]); ey1 = np.minimum(a[:, 1], c[:, 1])
    ex2 = np.maximum(a[:, 2], c[:, 2]); ey2 = np.maximum(a[:, 3], c[:, 3])
    are = (ex2 - ex1) * (ey2 - ey1)
    giou = iou - (are - union) / are
    gl = GIOU_COST * (1 - giou).sum() / nb
    return cls, bbox, gl


if __name__ == "__main__":
    key = jax.random.PRNGKey(0)
    B, Q, T = 2, 8, 4
    C1 = NUM_CLASS + 1
    ks = jax.random.split(key, 8)

    pred_class = jax.random.normal(ks[0], (B, Q, C1), jnp.float32)
    pred_bbox = jnp.concatenate(
        [jax.nn.sigmoid(jax.random.normal(ks[1], (B, Q, 2))),
         0.1 + 0.3 * jax.nn.sigmoid(jax.random.normal(ks[2], (B, Q, 2)))], -1)
    aux_class = jax.random.normal(ks[3], (B, Q, C1), jnp.float32)
    aux_bbox = jnp.concatenate(
        [jax.nn.sigmoid(jax.random.normal(ks[4], (B, Q, 2))),
         0.1 + 0.3 * jax.nn.sigmoid(jax.random.normal(ks[5], (B, Q, 2)))], -1)

    tgt_labels = jax.random.randint(ks[6], (B, T), 0, NUM_CLASS).astype(jnp.int32)
    tgt_boxes = jnp.concatenate(
        [0.25 + 0.5 * jax.random.uniform(ks[7], (B, T, 2)),
         0.1 + 0.2 * jax.random.uniform(jax.random.fold_in(key, 99), (B, T, 2))], -1)

    # emptyWeight buffer: ones(numClass + 1) with last entry = eosCost
    empty_weight = jnp.ones((C1,), jnp.float32).at[-1].set(EOS_COST)

    x = {'class': pred_class, 'bbox': pred_bbox,
         'aux': [{'class': aux_class, 'bbox': aux_bbox}]}
    y = {'labels': tgt_labels, 'boxes': tgt_boxes}   # fixed T targets per image

    losses = base_criterion_forward(x, y, empty_weight)
    jax.block_until_ready(losses)

    # correctness sanity check against a numpy reference (both heads)
    all_class = jnp.stack([pred_class, aux_class], axis=0)
    all_bbox = jnp.stack([pred_bbox, aux_bbox], axis=0)
    cls_l, bbox_l, giou_l, idx = compute_losses_stacked(
        all_class, all_bbox, tgt_labels, tgt_boxes, empty_weight)

    ref0 = _reference_losses(pred_class, pred_bbox, tgt_labels, tgt_boxes,
                             idx[:B], empty_weight)
    ref1 = _reference_losses(aux_class, aux_bbox, tgt_labels, tgt_boxes,
                             idx[B:2 * B], empty_weight)
    np.testing.assert_allclose(float(cls_l[0]), ref0[0], rtol=1e-3, atol=1e-3)
    np.testing.assert_allclose(float(bbox_l[0]), ref0[1], rtol=1e-3, atol=1e-3)
    np.testing.assert_allclose(float(giou_l[0]), ref0[2], rtol=1e-3, atol=1e-3)
    np.testing.assert_allclose(float(cls_l[1]), ref1[0], rtol=1e-3, atol=1e-3)
    np.testing.assert_allclose(float(bbox_l[1]), ref1[1], rtol=1e-3, atol=1e-3)
    np.testing.assert_allclose(float(giou_l[1]), ref1[2], rtol=1e-3, atol=1e-3)
    for k, v in losses.items():
        assert np.isfinite(float(v)), k

    print("KERNEL_OK")
</pallas_src>

<mosaic_0001>
module attributes {stable_mosaic.version = 11 : i64} {
  func.func @_matcher_cost_kernel(%arg0: memref<4x8x128xf32, #tpu.memory_space<vmem>>, %arg1: memref<4x8x4xf32, #tpu.memory_space<vmem>>, %arg2: memref<4x128x128xf32, #tpu.memory_space<vmem>>, %arg3: memref<4x4x128xf32, #tpu.memory_space<vmem>>, %arg4: memref<4x8x128xf32, #tpu.memory_space<vmem>>) attributes {dimension_semantics = [], scalar_prefetch = 0 : i64, scratch_operands = 0 : i64, tpu.core_type = #tpu.core_type<tc>} {
    %c0 = arith.constant 0 : index
    %c0_0 = arith.constant 0 : index
    %c0_1 = arith.constant 0 : index
    %0 = vector.load %arg0[%c0, %c0_0, %c0_1] : memref<4x8x128xf32, #tpu.memory_space<vmem>>, vector<4x8x128xf32>
    %cst = arith.constant dense<0xFF800000> : vector<4x8xf32>
    %1 = vector.multi_reduction <maximumf>, %0, %cst [2] : vector<4x8x128xf32> to vector<4x8xf32>
    %2 = vector.shape_cast %1 : vector<4x8xf32> to vector<4x8x1xf32>
    %3 = vector.broadcast %2 : vector<4x8x1xf32> to vector<4x8x128xf32>
    %4 = arith.subf %0, %3 : vector<4x8x128xf32>
    %5 = math.exp %4 : vector<4x8x128xf32>
    %cst_2 = arith.constant dense<0.000000e+00> : vector<4x8xf32>
    %6 = vector.multi_reduction <add>, %5, %cst_2 [2] : vector<4x8x128xf32> to vector<4x8xf32>
    %7 = vector.shape_cast %6 : vector<4x8xf32> to vector<4x8x1xf32>
    %8 = tpu.reciprocal %7 {approx = true} : vector<4x8x1xf32> -> vector<4x8x1xf32>
    %9 = vector.broadcast %8 : vector<4x8x1xf32> to vector<4x8x128xf32>
    %10 = arith.mulf %5, %9 : vector<4x8x128xf32>
    %c0_3 = arith.constant 0 : index
    %c0_4 = arith.constant 0 : index
    %c0_5 = arith.constant 0 : index
    %11 = vector.load %arg2[%c0_3, %c0_4, %c0_5] : memref<4x128x128xf32, #tpu.memory_space<vmem>>, vector<4x128x128xf32>
    "tpu.trace_start"() <{level = 10 : i32, message = "bqc,bct->bqt"}> : () -> ()
    %cst_6 = arith.constant dense<0.000000e+00> : vector<4x8x128xf32>
    %12 = tpu.matmul %10, %11, %cst_6 {dimension_numbers = #tpu.dot_dimension_numbers<[2], [1], [1], [2], [0, 0, 0, 1, 1, 2], [0], [0]>} : vector<4x8x128xf32>, vector<4x128x128xf32>, vector<4x8x128xf32> -> vector<4x8x128xf32>
    "tpu.trace_stop"() : () -> ()
    %cst_7 = arith.constant 0.000000e+00 : f32
    %13 = vector.broadcast %cst_7 : f32 to vector<4x8x128xf32>
    %14 = arith.subf %13, %12 : vector<4x8x128xf32>
    %c0_8 = arith.constant 0 : index
    %c0_9 = arith.constant 0 : index
    %c0_10 = arith.constant 0 : index
    %15 = vector.load %arg1[%c0_8, %c0_9, %c0_10] : memref<4x8x4xf32, #tpu.memory_space<vmem>>, vector<4x8x4xf32>
    %c0_11 = arith.constant 0 : index
    %c0_12 = arith.constant 0 : index
    %c0_13 = arith.constant 0 : index
    %16 = vector.load %arg3[%c0_11, %c0_12, %c0_13] : memref<4x4x128xf32, #tpu.memory_space<vmem>>, vector<4x4x128xf32>
    %17 = vector.extract_strided_slice %15 {offsets = [0, 0, 0], sizes = [4, 8, 1], strides = [1, 1, 1]} : vector<4x8x4xf32> to vector<4x8x1xf32>
    %18 = vector.extract_strided_slice %15 {offsets = [0, 0, 1], sizes = [4, 8, 1], strides = [1, 1, 1]} : vector<4x8x4xf32> to vector<4x8x1xf32>
    %19 = vector.extract_strided_slice %15 {offsets = [0, 0, 2], sizes = [4, 8, 1], strides = [1, 1, 1]} : vector<4x8x4xf32> to vector<4x8x1xf32>
    %20 = vector.extract_strided_slice %15 {offsets = [0, 0, 3], sizes = [4, 8, 1], strides = [1, 1, 1]} : vector<4x8x4xf32> to vector<4x8x1xf32>
    %21 = vector.extract_strided_slice %16 {offsets = [0, 0, 0], sizes = [4, 1, 128], strides = [1, 1, 1]} : vector<4x4x128xf32> to vector<4x1x128xf32>
    %22 = vector.extract_strided_slice %16 {offsets = [0, 1, 0], sizes = [4, 1, 128], strides = [1, 1, 1]} : vector<4x4x128xf32> to vector<4x1x128xf32>
    %23 = vector.extract_strided_slice %16 {offsets = [0, 2, 0], sizes = [4, 1, 128], strides = [1, 1, 1]} : vector<4x4x128xf32> to vector<4x1x128xf32>
    %24 = vector.extract_strided_slice %16 {offsets = [0, 3, 0], sizes = [4, 1, 128], strides = [1, 1, 1]} : vector<4x4x128xf32> to vector<4x1x128xf32>
    %25 = vector.broadcast %17 : vector<4x8x1xf32> to vector<4x8x128xf32>
    %26 = vector.broadcast %21 : vector<4x1x128xf32> to vector<4x8x128xf32>
    %27 = arith.subf %25, %26 : vector<4x8x128xf32>
    %28 = math.absf %27 : vector<4x8x128xf32>
    %29 = vector.broadcast %18 : vector<4x8x1xf32> to vector<4x8x128xf32>
    %30 = vector.broadcast %22 : vector<4x1x128xf32> to vector<4x8x128xf32>
    %31 = arith.subf %29, %30 : vector<4x8x128xf32>
    %32 = math.absf %31 : vector<4x8x128xf32>
    %33 = arith.addf %28, %32 : vector<4x8x128xf32>
    %34 = vector.broadcast %19 : vector<4x8x1xf32> to vector<4x8x128xf32>
    %35 = vector.broadcast %23 : vector<4x1x128xf32> to vector<4x8x128xf32>
    %36 = arith.subf %34, %35 : vector<4x8x128xf32>
    %37 = math.absf %36 : vector<4x8x128xf32>
    %38 = arith.addf %33, %37 : vector<4x8x128xf32>
    %39 = vector.broadcast %20 : vector<4x8x1xf32> to vector<4x8x128xf32>
    %40 = vector.broadcast %24 : vector<4x1x128xf32> to vector<4x8x128xf32>
    %41 = arith.subf %39, %40 : vector<4x8x128xf32>
    %42 = math.absf %41 : vector<4x8x128xf32>
    %43 = arith.addf %38, %42 : vector<4x8x128xf32>
    %cst_14 = arith.constant 5.000000e-01 : f32
    %44 = vector.broadcast %cst_14 : f32 to vector<4x8x1xf32>
    %45 = arith.mulf %44, %19 : vector<4x8x1xf32>
    %46 = arith.subf %17, %45 : vector<4x8x1xf32>
    %cst_15 = arith.constant 5.000000e-01 : f32
    %47 = vector.broadcast %cst_15 : f32 to vector<4x8x1xf32>
    %48 = arith.mulf %47, %20 : vector<4x8x1xf32>
    %49 = arith.subf %18, %48 : vector<4x8x1xf32>
    %cst_16 = arith.constant 5.000000e-01 : f32
    %50 = vector.broadcast %cst_16 : f32 to vector<4x8x1xf32>
    %51 = arith.mulf %50, %19 : vector<4x8x1xf32>
    %52 = arith.addf %17, %51 : vector<4x8x1xf32>
    %cst_17 = arith.constant 5.000000e-01 : f32
    %53 = vector.broadcast %cst_17 : f32 to vector<4x8x1xf32>
    %54 = arith.mulf %53, %20 : vector<4x8x1xf32>
    %55 = arith.addf %18, %54 : vector<4x8x1xf32>
    %cst_18 = arith.constant 5.000000e-01 : f32
    %56 = vector.broadcast %cst_18 : f32 to vector<4x1x128xf32>
    %57 = arith.mulf %56, %23 : vector<4x1x128xf32>
    %58 = arith.subf %21, %57 : vector<4x1x128xf32>
    %cst_19 = arith.constant 5.000000e-01 : f32
    %59 = vector.broadcast %cst_19 : f32 to vector<4x1x128xf32>
    %60 = arith.mulf %59, %24 : vector<4x1x128xf32>
    %61 = arith.subf %22, %60 : vector<4x1x128xf32>
    %cst_20 = arith.constant 5.000000e-01 : f32
    %62 = vector.broadcast %cst_20 : f32 to vector<4x1x128xf32>
    %63 = arith.mulf %62, %23 : vector<4x1x128xf32>
    %64 = arith.addf %21, %63 : vector<4x1x128xf32>
    %cst_21 = arith.constant 5.000000e-01 : f32
    %65 = vector.broadcast %cst_21 : f32 to vector<4x1x128xf32>
    %66 = arith.mulf %65, %24 : vector<4x1x128xf32>
    %67 = arith.addf %22, %66 : vector<4x1x128xf32>
    %68 = vector.broadcast %46 : vector<4x8x1xf32> to vector<4x8x128xf32>
    %69 = vector.broadcast %58 : vector<4x1x128xf32> to vector<4x8x128xf32>
    %70 = arith.maximumf %68, %69 : vector<4x8x128xf32>
    %71 = vector.broadcast %49 : vector<4x8x1xf32> to vector<4x8x128xf32>
    %72 = vector.broadcast %61 : vector<4x1x128xf32> to vector<4x8x128xf32>
    %73 = arith.maximumf %71, %72 : vector<4x8x128xf32>
    %74 = vector.broadcast %52 : vector<4x8x1xf32> to vector<4x8x128xf32>
    %75 = vector.broadcast %64 : vector<4x1x128xf32> to vector<4x8x128xf32>
    %76 = arith.minimumf %74, %75 : vector<4x8x128xf32>
    %77 = vector.broadcast %55 : vector<4x8x1xf32> to vector<4x8x128xf32>
    %78 = vector.broadcast %67 : vector<4x1x128xf32> to vector<4x8x128xf32>
    %79 = arith.minimumf %77, %78 : vector<4x8x128xf32>
    %80 = arith.subf %76, %70 : vector<4x8x128xf32>
    %cst_22 = arith.constant 0.000000e+00 : f32
    %81 = vector.broadcast %cst_22 : f32 to vector<4x8x128xf32>
    %82 = arith.maximumf %80, %81 : vector<4x8x128xf32>
    %83 = arith.subf %79, %73 : vector<4x8x128xf32>
    %cst_23 = arith.constant 0.000000e+00 : f32
    %84 = vector.broadcast %cst_23 : f32 to vector<4x8x128xf32>
    %85 = arith.maximumf %83, %84 : vector<4x8x128xf32>
    %86 = arith.mulf %82, %85 : vector<4x8x128xf32>
    %87 = arith.subf %52, %46 : vector<4x8x1xf32>
    %88 = arith.subf %55, %49 : vector<4x8x1xf32>
    %89 = arith.mulf %87, %88 : vector<4x8x1xf32>
    %90 = arith.subf %64, %58 : vector<4x1x128xf32>
    %91 = arith.subf %67, %61 : vector<4x1x128xf32>
    %92 = arith.mulf %90, %91 : vector<4x1x128xf32>
    %93 = vector.broadcast %89 : vector<4x8x1xf32> to vector<4x8x128xf32>
    %94 = vector.broadcast %92 : vector<4x1x128xf32> to vector<4x8x128xf32>
    %95 = arith.addf %93, %94 : vector<4x8x128xf32>
    %96 = arith.subf %95, %86 : vector<4x8x128xf32>
    %cst_24 = arith.constant 9.99999971E-10 : f32
    %97 = vector.broadcast %cst_24 : f32 to vector<4x8x128xf32>
    %98 = arith.maximumf %96, %97 : vector<4x8x128xf32>
    %99 = tpu.reciprocal %98 {approx = true} : vector<4x8x128xf32> -> vector<4x8x128xf32>
    %100 = arith.mulf %86, %99 : vector<4x8x128xf32>
    %101 = vector.broadcast %46 : vector<4x8x1xf32> to vector<4x8x128xf32>
    %102 = vector.broadcast %58 : vector<4x1x128xf32> to vector<4x8x128xf32>
    %103 = arith.minimumf %101, %102 : vector<4x8x128xf32>
    %104 = vector.broadcast %49 : vector<4x8x1xf32> to vector<4x8x128xf32>
    %105 = vector.broadcast %61 : vector<4x1x128xf32> to vector<4x8x128xf32>
    %106 = arith.minimumf %104, %105 : vector<4x8x128xf32>
    %107 = vector.broadcast %52 : vector<4x8x1xf32> to vector<4x8x128xf32>
    %108 = vector.broadcast %64 : vector<4x1x128xf32> to vector<4x8x128xf32>
    %109 = arith.maximumf %107, %108 : vector<4x8x128xf32>
    %110 = vector.broadcast %55 : vector<4x8x1xf32> to vector<4x8x128xf32>
    %111 = vector.broadcast %67 : vector<4x1x128xf32> to vector<4x8x128xf32>
    %112 = arith.maximumf %110, %111 : vector<4x8x128xf32>
    %113 = arith.subf %109, %103 : vector<4x8x128xf32>
    %114 = arith.subf %112, %106 : vector<4x8x128xf32>
    %115 = arith.mulf %113, %114 : vector<4x8x128xf32>
    %116 = arith.subf %115, %96 : vector<4x8x128xf32>
    %cst_25 = arith.constant 9.99999971E-10 : f32
    %117 = vector.broadcast %cst_25 : f32 to vector<4x8x128xf32>
    %118 = arith.maximumf %115, %117 : vector<4x8x128xf32>
    %119 = tpu.reciprocal %118 {approx = true} : vector<4x8x128xf32> -> vector<4x8x128xf32>
    %120 = arith.mulf %116, %119 : vector<4x8x128xf32>
    %121 = arith.subf %100, %120 : vector<4x8x128xf32>
    %cst_26 = arith.constant 1.000000e+00 : f32
    %122 = vector.broadcast %cst_26 : f32 to vector<4x8x128xf32>
    %123 = arith.mulf %122, %14 : vector<4x8x128xf32>
    %cst_27 = arith.constant 5.000000e+00 : f32
    %124 = vector.broadcast %cst_27 : f32 to vector<4x8x128xf32>
    %125 = arith.mulf %124, %43 : vector<4x8x128xf32>
    %126 = arith.addf %123, %125 : vector<4x8x128xf32>
    %cst_28 = arith.constant 0.000000e+00 : f32
    %127 = vector.broadcast %cst_28 : f32 to vector<4x8x128xf32>
    %128 = arith.subf %127, %121 : vector<4x8x128xf32>
    %cst_29 = arith.constant 2.000000e+00 : f32
    %129 = vector.broadcast %cst_29 : f32 to vector<4x8x128xf32>
    %130 = arith.mulf %129, %128 : vector<4x8x128xf32>
    %131 = arith.addf %126, %130 : vector<4x8x128xf32>
    %c0_30 = arith.constant 0 : index
    %c0_31 = arith.constant 0 : index
    %c0_32 = arith.constant 0 : index
    %132 = vector.load %arg4[%c0_30, %c0_31, %c0_32] : memref<4x8x128xf32, #tpu.memory_space<vmem>>, vector<4x8x128xf32>
    tpu.vector_store %arg4[%c0_30, %c0_31, %c0_32], %131 {strides = array<i32>} : memref<4x8x128xf32, #tpu.memory_space<vmem>>, vector<4x8x128xf32>,
    return
  }
}

</mosaic_0001>

<bundles_post_ra>
// kernel: tpu_custom_call.1
= control target key start
LH: loop header
LB: loop body
LE: loop exit
PB: predicated region body
PF: predicated region fallthrough
CT: control target
= control target key end

     0   :  { %9 = vsyncpa [#allocation3], 0  ;;  %s1840_s0 = inlined_call_operand.vmem [shape: f32[4,8,128], index: 0, kind: input, shape index: {}]   ;;  %s1841_s1 = inlined_call_operand.vmem [shape: f32[4,8,4], index: 1, kind: input, shape index: {}]   ;;  %s1842_s2 = inlined_call_operand.hbm [shape: f32[4,128,128], index: 2, kind: input, shape index: {}]   ;;  %s1843_s3 = inlined_call_operand.vmem [shape: f32[4,4,128], index: 3, kind: input, shape index: {}]   ;;  %s1844_s4 = inlined_call_operand.hbm [shape: f32[4,8,128], index: 4, kind: output, shape index: {}]  }
   0x1   :  { %10 = vsyncpa [#allocation4], 0  ;;  %s1328_s15 = smov [#allocation2]  }
   0x2   :  { %s20_s16 = sshll.u32 %s1328_s15, 4  ;;  %s21_s16 = int_to_ptr.vmem [resolvable:$true] %s20_s16 }
   0x3   :  { %s1292_s17 = scalar_lea.vmem %s21_s16, 8192  ;;  %p1297_p1 = scmp.lt.s32.totalorder %s21_s16, %s21_s16 }
   0x4   :  { %p1293_p0 = scmp.ne.s32.totalorder %s21_s16, %s1292_s17  ;;  %p1298_p2 = scmp.lt.s32.totalorder %s1292_s17, %s1292_s17 }
   0x6   :  { %p1299_p3 = por %p1298_p2, %p1297_p1 }
   0x8   :  { %p1300_p4 = pnand %p1299_p3, %p1293_p0 }
   0xa   :  { %1303 = shalt.err (!%p1300_p4)
}
   0xb   :  { %s1329_s18 = smov 128   ;;  %s1330_s19 = smov 8  }
   0xc   :  { %26 = dma.hbm_to_vmem [thread:$0]  %s1842_s2, 8192, %s21_s16, [#allocation3], %s1329_s18, %s1329_s18, %s1330_s19  }
   0xd   :  { %1324 = dma.done.wait [#allocation3], 8192  }
   0xe   :  { %1325 = vsyncadd [#allocation3], 4294959104  ;;  %v32_v0 = vld [vmem:[%s1840_s0] sm:$0xff]  ;;  %v34_v1 = vld [vmem:[%s1840_s0 + $0x10] sm:$0xff]  ;;  %v1331_v5 = vmov 0.0   ;;  %v1332_v18 = vmov 0  }
   0xf   :  { %36 = vmax.xlane.f32.xlu0 %v32_v0  ;;  %40 = vmax.xlane.f32.xlu1 %v34_v1  ;;  %v1380_v2 = vld [vmem:[%s1840_s0 + $0x8] sm:$0xff]  ;;  %v1385_v3 = vld [vmem:[%s1840_s0 + $0x18] sm:$0xff]  ;;  %v86_v6 = vld [vmem:[#allocation2 + $0x70] sm:$0xff]  ;;  %s1333_s8 = smov 126   ;;  %vm1334_vm0 = vmmov 0   ;;  %v1335_v62 = vmov 2  }
  0x10   :  { %v87_v4 = vld [vmem:[#allocation2 + $0x78] sm:$0xff]  ;;  %1085 = vmatprep.subr.mxu0 %v1331_v5  ;;  %1120 = vmatprep.subr.mxu1 %v1331_v5  ;;  %v102_v8 = vld [vmem:[#allocation2 + $0xf0] sm:$0xff]  ;;  %v85_v9 = vld [vmem:[#allocation2 + $0x68] sm:$0xff] }
  0x11   :  { %v103_v7 = vld [vmem:[#allocation2 + $0xf8] sm:$0xff]  ;;  %1086 = vmatpush3.msra.mxu0 %v87_v4  ;;  %v101_v10 = vld [vmem:[#allocation2 + $0xe8] sm:$0xff]  ;;  %v84_v11 = vld [vmem:[#allocation2 + $0x60] sm:$0xff]  ;;  %1237 = vset.pattern.permute.xlu1 %v1332_v18 }
  0x12   :  { %1121 = vmatpush3.msra.mxu1 %v103_v7  ;;  %1087 = vmatprep.subr.mxu0 %v1331_v5  ;;  %v100_v12 = vld [vmem:[#allocation2 + $0xe0] sm:$0xff]  ;;  %v83_v13 = vld [vmem:[#allocation2 + $0x58] sm:$0xff]  ;;  %v82_v15 = vld [vmem:[#allocation2 + $0x50] sm:$0xff] }
  0x13   :  { %38 = vmax.xlane.f32.xlu0 %v1380_v2  ;;  %42 = vmax.xlane.f32.xlu1 %v1385_v3  ;;  %v99_v14 = vld [vmem:[#allocation2 + $0xd8] sm:$0xff]  ;;  %v98_v16 = vld [vmem:[#allocation2 + $0xd0] sm:$0xff]  ;;  %v81_v17 = vld [vmem:[#allocation2 + $0x48] sm:$0xff] }
  0x14   :  { %1122 = vmatprep.subr.mxu1 %v1331_v5  ;;  %1088 = vmatpush3.msra.mxu0 %v86_v6  ;;  %v80_v19 = vld [vmem:[#allocation2 + $0x40] sm:$0xff]  ;;  %v79_v36 = vld [vmem:[#allocation2 + $0x38] sm:$0xff]  ;;  %v97_v37 = vld [vmem:[#allocation2 + $0xc8] sm:$0xff] }
  0x15   :  { %1123 = vmatpush3.msra.mxu1 %v102_v8  ;;  %1089 = vmatprep.subr.mxu0 %v1331_v5  ;;  %v78_v38 = vld [vmem:[#allocation2 + $0x30] sm:$0xff]  ;;  %v96_v39 = vld [vmem:[#allocation2 + $0xc0] sm:$0xff]  ;;  %v77_v40 = vld [vmem:[#allocation2 + $0x28] sm:$0xff] }
  0x16   :  { %1124 = vmatprep.subr.mxu1 %v1331_v5  ;;  %1090 = vmatpush3.msra.mxu0 %v85_v9  ;;  %v95_v41 = vld [vmem:[#allocation2 + $0xb8] sm:$0xff]  ;;  %v76_v42 = vld [vmem:[#allocation2 + $0x20] sm:$0xff]  ;;  %v94_v43 = vld [vmem:[#allocation2 + $0xb0] sm:$0xff] }
  0x17   :  { %1125 = vmatpush3.msra.mxu1 %v101_v10  ;;  %1091 = vmatprep.subr.mxu0 %v1331_v5  ;;  %v1429_v44 = vld [vmem:[%s1841_s1 + $0x8] sm:$0xff]  ;;  %v75_v45 = vld [vmem:[#allocation2 + $0x18] sm:$0xff]  ;;  %v74_v47 = vld [vmem:[#allocation2 + $0x10] sm:$0xff] }
  0x18   :  { %1126 = vmatprep.subr.mxu1 %v1331_v5  ;;  %1092 = vmatpush3.msra.mxu0 %v84_v11  ;;  %v93_v46 = vld [vmem:[#allocation2 + $0xa8] sm:$0xff]  ;;  %v1436_v48 = vld [vmem:[%s1841_s1] sm:$0xff]  ;;  %v605_v50 = vmul.f32 0.5, %v1429_v44  ;;  %v1444_v51 = vld [vmem:[%s1841_s1 + $0x10] sm:$0xff] }
  0x19   :  { %1127 = vmatpush3.msra.mxu1 %v100_v12  ;;  %1093 = vmatprep.subr.mxu0 %v1331_v5  ;;  %v92_v49 = vld [vmem:[#allocation2 + $0xa0] sm:$0xff]  ;;  %v604_v52 = vmul.f32 0.5, %v1436_v48  ;;  %v73_v53 = vld [vmem:[#allocation2 + $0x8] sm:$0xff]  ;;  %v91_v54 = vld [vmem:[#allocation2 + $0x98] sm:$0xff]  ;;  %v606_v57 = vmul.f32 0.5, %v1444_v51 }
  0x1a   :  { %1128 = vmatprep.subr.mxu1 %v1331_v5  ;;  %1094 = vmatpush3.msra.mxu0 %v83_v13  ;;  %v72_v55 = vld [vmem:[#allocation2] sm:$0xff]  ;;  %v90_v56 = vld [vmem:[#allocation2 + $0x90] sm:$0xff]  ;;  %v1455_v58 = vld [vmem:[%s1841_s1 + $0x18] sm:$0xff]  ;;  %s1336_s1 = smov 127  }
  0x1b   :  { %1129 = vmatpush3.msra.mxu1 %v99_v14  ;;  %1095 = vmatprep.subr.mxu0 %v1331_v5  ;;  %v89_v59 = vld [vmem:[#allocation2 + $0x88] sm:$0xff]  ;;  %v88_v60 = vld [vmem:[#allocation2 + $0x80] sm:$0xff]  ;;  %v607_v61 = vmul.f32 0.5, %v1455_v58  ;;  %v119_v14 = vld [vmem:[#allocation2 + $0x178] sm:$0xff] }
  0x1c   :  { %1130 = vmatprep.subr.mxu1 %v1331_v5  ;;  %1096 = vmatpush3.msra.mxu0 %v82_v15 }
  0x1d   :  { %1097 = vmatprep.subr.mxu0 %v1331_v5  ;;  %1131 = vmatpush3.msra.mxu1 %v98_v16 }
  0x1e   :  { %1098 = vmatpush3.msra.mxu0 %v81_v17  ;;  %1132 = vmatprep.subr.mxu1 %v1331_v5 }
  0x1f   :  { %1099 = vmatprep.subr.mxu0 %v1331_v5  ;;  %1133 = vmatpush3.msra.mxu1 %v97_v37  ;;  %v131_v37 = vld [vmem:[#allocation2 + $0x1d8] sm:$0xff] }
  0x20   :  { %1100 = vmatpush3.msra.mxu0 %v80_v19  ;;  %1134 = vmatprep.subr.mxu1 %v1331_v5  ;;  %v118_v19 = vld [vmem:[#allocation2 + $0x170] sm:$0xff] }
  0x21   :  { %1101 = vmatprep.subr.mxu0 %v1331_v5  ;;  %1135 = vmatpush3.msra.mxu1 %v96_v39  ;;  %v112_v39 = vld [vmem:[#allocation2 + $0x140] sm:$0xff] }
  0x22   :  { %1102 = vmatpush3.msra.mxu0 %v79_v36  ;;  %1136 = vmatprep.subr.mxu1 %v1331_v5  ;;  %v132_v36 = vld [vmem:[#allocation2 + $0x1e0] sm:$0xff] }
  0x23   :  { %1103 = vmatprep.subr.mxu0 %v1331_v5  ;;  %1137 = vmatpush3.msra.mxu1 %v95_v41  ;;  %v1337_v41 = vmov 1  }
  0x24   :  { %1104 = vmatpush3.msra.mxu0 %v78_v38  ;;  %1138 = vmatprep.subr.mxu1 %v1331_v5  ;;  %v113_v38 = vld [vmem:[#allocation2 + $0x148] sm:$0xff] }
  0x25   :  { %1105 = vmatprep.subr.mxu0 %v1331_v5  ;;  %1139 = vmatpush3.msra.mxu1 %v94_v43  ;;  %v111_v43 = vld [vmem:[#allocation2 + $0x138] sm:$0xff] }
  0x26   :  { %1106 = vmatpush3.msra.mxu0 %v77_v40  ;;  %1140 = vmatprep.subr.mxu1 %v1331_v5  ;;  %v130_v40 = vld [vmem:[#allocation2 + $0x1d0] sm:$0xff] }
  0x27   :  { %1107 = vmatprep.subr.mxu0 %v1331_v5  ;;  %1141 = vmatpush3.msra.mxu1 %v93_v46  ;;  %v128_v46 = vld [vmem:[#allocation2 + $0x1c0] sm:$0xff] }
  0x28   :  { %1108 = vmatpush3.msra.mxu0 %v76_v42  ;;  %1142 = vmatprep.subr.mxu1 %v1331_v5  ;;  %v129_v42 = vld [vmem:[#allocation2 + $0x1c8] sm:$0xff] }
  0x29   :  { %1109 = vmatprep.subr.mxu0 %v1331_v5  ;;  %1143 = vmatpush3.msra.mxu1 %v92_v49  ;;  %v109_v49 = vld [vmem:[#allocation2 + $0x128] sm:$0xff] }
  0x2a   :  { %1110 = vmatpush3.msra.mxu0 %v75_v45  ;;  %1144 = vmatprep.subr.mxu1 %v1331_v5  ;;  %v110_v45 = vld [vmem:[#allocation2 + $0x130] sm:$0xff] }
  0x2b   :  { %1111 = vmatprep.subr.mxu0 %v1331_v5  ;;  %1145 = vmatpush3.msra.mxu1 %v91_v54  ;;  %v125_v54 = vld [vmem:[#allocation2 + $0x1a8] sm:$0xff] }
  0x2c   :  { %1112 = vmatpush3.msra.mxu0 %v74_v47  ;;  %1146 = vmatprep.subr.mxu1 %v1331_v5  ;;  %v127_v47 = vld [vmem:[#allocation2 + $0x1b8] sm:$0xff] }
  0x2d   :  { %1113 = vmatprep.subr.mxu0 %v1331_v5  ;;  %1147 = vmatpush3.msra.mxu1 %v90_v56  ;;  %v124_v56 = vld [vmem:[#allocation2 + $0x1a0] sm:$0xff] }
  0x2e   :  { %1114 = vmatpush3.msra.mxu0 %v73_v53  ;;  %1117 = vmatprep.mubr.msk.f32.mxu0 %vm1334_vm0, %v1331_v5  ;;  %v107_v53 = vld [vmem:[#allocation2 + $0x118] sm:$0xff] }
  0x2f   :  { %1115 = vmatprep.subr.mxu0 %v1331_v5  ;;  %1148 = vmatprep.subr.mxu1 %v1331_v5 }
  0x30   :  { %1116 = vmatpush3.msra.mxu0 %v72_v55  ;;  %1149 = vmatpush3.msra.mxu1 %v89_v59  ;;  %v106_v55 = vld [vmem:[#allocation2 + $0x110] sm:$0xff]  ;;  %v123_v59 = vld [vmem:[#allocation2 + $0x198] sm:$0xff] }
  0x31   :  { %1155 = vmatprep.subr.mxu0 %v1331_v5  ;;  %1150 = vmatprep.subr.mxu1 %v1331_v5 }
  0x32   :  { %1151 = vmatpush3.msra.mxu1 %v88_v60  ;;  %1152 = vmatprep.mubr.msk.f32.mxu1 %vm1334_vm0, %v1331_v5 }
  0x33   :  { %1190 = vmatprep.subr.mxu1 %v1331_v5  ;;  %1239 = vset.pattern.permute.xlu0 %v1335_v62 }
  0x98   :  { %v37_v20 = vpop.xlane.xlu0 %36  ;;  %v41_v21 = vpop.xlane.xlu1 %40 }
  0x99   :  { %v44_v22 = vsub.f32 %v32_v0, %v37_v20  ;;  %v46_v23 = vsub.f32 %v34_v1, %v41_v21 }
  0x9b   :  { %v48_v24 = vmul.f32 1.442695, %v44_v22  ;;  %v52_v25 = vmul.f32 1.442695, %v46_v23  ;;  %v117_v22 = vld [vmem:[#allocation2 + $0x168] sm:$0xff]  ;;  %v135_v23 = vld [vmem:[#allocation2 + $0x1f8] sm:$0xff] }
  0x9c   :  { %v39_v26 = vpop.xlane.xlu0 %38  ;;  %v43_v27 = vpop.xlane.xlu1 %42 }
  0x9d   :  { %1252 = vpow2.f32 %v48_v24  ;;  %v45_v28 = vsub.f32 %v1380_v2, %v39_v26  ;;  %v47_v29 = vsub.f32 %v1385_v3, %v43_v27 }
  0x9e   :  { %1254 = vpow2.f32 %v52_v25 }
  0x9f   :  { %v50_v30 = vmul.f32 1.442695, %v45_v28  ;;  %v54_v31 = vmul.f32 1.442695, %v47_v29  ;;  %v116_v28 = vld [vmem:[#allocation2 + $0x160] sm:$0xff]  ;;  %v134_v29 = vld [vmem:[#allocation2 + $0x1f0] sm:$0xff] }
  0xa1   :  { %1256 = vpow2.f32 %v50_v30 }
  0xa2   :  { %1258 = vpow2.f32 %v54_v31  ;;  %v133_v31 = vld [vmem:[#allocation2 + $0x1e8] sm:$0xff] }
  0xaa   :  { %v1408_v32 = vpop.eup %1252 }
  0xab   :  { %56 = vadd.xlane.f32.xlu0 %v1408_v32  ;;  %v1411_v33 = vpop.eup %1254 }
  0xae   :  { %v1413_v34 = vpop.eup %1256 }
  0xaf   :  { %60 = vadd.xlane.f32.xlu0 %v1411_v33  ;;  %58 = vadd.xlane.f32.xlu1 %v1413_v34  ;;  %v1417_v35 = vpop.eup %1258 }
  0xb3   :  { %62 = vadd.xlane.f32.xlu1 %v1417_v35 }
  0xc4   :  { %614 = vrot.lane.b32.xlu1 %v605_v50, %s1333_s8  ;;  %v108_v50 = vld [vmem:[#allocation2 + $0x120] sm:$0xff] }
  0xc5   :  { %612 = vrot.lane.b32.xlu0 %v604_v52, %s1333_s8  ;;  %v126_v52 = vld [vmem:[#allocation2 + $0x1b0] sm:$0xff] }
  0xc8   :  { %616 = vrot.lane.b32.xlu1 %v606_v57, %s1333_s8  ;;  %v105_v57 = vld [vmem:[#allocation2 + $0x108] sm:$0xff] }
  0xcc   :  { %618 = vrot.lane.b32.xlu1 %v607_v61, %s1333_s8  ;;  %v122_v61 = vld [vmem:[#allocation2 + $0x190] sm:$0xff] }
  0xd0   :  { %435 = vperm.xlu1 %1237, %v1429_v44  }
 0x134   :  { %v57_v63 = vpop.xlane.xlu0 %56 }
 0x135   :  { %1260 = vrcp.f32 %v57_v63  ;;  %v104_v63 = vld [vmem:[#allocation2 + $0x100] sm:$0xff] }
 0x138   :  { %v59_v0 = vpop.xlane.xlu1 %58  ;;  %v1468_v1 = vpop.xlane.xlu0 %60 }
 0x139   :  { %1262 = vrcp.f32 %v59_v0  ;;  %v121_v0 = vld [vmem:[#allocation2 + $0x188] sm:$0xff] }
 0x13a   :  { %1264 = vrcp.f32 %v1468_v1 }
 0x13c   :  { %v1470_v2 = vpop.xlane.xlu1 %62  ;;  %v613_v3 = vpop.permute.xlu0 %612 }
 0x13d   :  { %v1473_v4 = vsub.f32 %v1436_v48, %v613_v3  ;;  %v1476_v6 = vadd.f32 %v613_v3, %v1436_v48  ;;  %1266 = vrcp.f32 %v1470_v2  ;;  %v120_v2 = vld [vmem:[#allocation2 + $0x180] sm:$0xff] }
 0x13f   :  { %v1480_v7 = vsub.f32 %v1476_v6, %v1473_v4 }
 0x140   :  { %v615_v8 = vpop.permute.xlu1 %614 }
 0x141   :  { %v1483_v9 = vsub.f32 %v1429_v44, %v615_v8  ;;  %v1486_v10 = vadd.f32 %v615_v8, %v1429_v44  ;;  %836 = vrot.lane.b32.xlu1 %v1480_v7, %s1336_s1 }
 0x142   :  { %v1261_v11 = vpop.eup %1260 }
 0x143   :  { %v1492_v12 = vsub.f32 %v1486_v10, %v1483_v9  ;;  %v68_v13 = vmul.f32 %v1261_v11, %v1408_v32  ;;  %v115_v32 = vld [vmem:[#allocation2 + $0x158] sm:$0xff] }
 0x144   :  { %v617_v15 = vpop.permute.xlu1 %616 }
 0x145   :  { %v1496_v16 = vsub.f32 %v1444_v51, %v617_v15  ;;  %v1499_v17 = vadd.f32 %v617_v15, %v1444_v51  ;;  %838 = vrot.lane.b32.xlu0 %v1492_v12, %s1336_s1  ;;  %1118 = vmatmul.mubr.f32.vlgmr.msra.gmra.mxu0 %v68_v13  ;;  %v448_v13 = vlaneseq }
 0x146   :  { %v1263_v20 = vpop.eup %1262  ;;  %1156 = vmatpush3.msra.mxu0 %v119_v14  ;;  %1187 = vmatprep.mubr.msk.f32.mxu0 %vm1334_vm0, %v1331_v5 }
 0x147   :  { %1157 = vmatprep.subr.mxu0 %v1331_v5  ;;  %v69_v21 = vmul.f32 %v1263_v20, %v1413_v34  ;;  %v1509_v24 = vsub.f32 %v1499_v17, %v1496_v16  ;;  %v114_v34 = vld [vmem:[#allocation2 + $0x150] sm:$0xff]  ;;  %v1265_v60 = vpop.eup %1264 }
 0x148   :  { %1158 = vmatpush3.msra.mxu0 %v118_v19  ;;  %v619_v25 = vpop.permute.xlu1 %618 }
 0x149   :  { %v1512_v26 = vsub.f32 %v1455_v58, %v619_v25  ;;  %v1515_v27 = vadd.f32 %v619_v25, %v1455_v58  ;;  %1159 = vmatprep.subr.mxu0 %v1331_v5  ;;  %1153 = vmatmul.mubr.f32.vlgmr.msra.gmra.mxu1 %v69_v21 }
 0x14a   :  { %1160 = vmatpush3.msra.mxu0 %v117_v22  ;;  %1191 = vmatpush3.msra.mxu1 %v135_v23  ;;  %v1267_v1 = vpop.eup %1266 }
 0x14b   :  { %840 = vrot.lane.b32.xlu1 %v1509_v24, %s1336_s1  ;;  %1161 = vmatprep.subr.mxu0 %v1331_v5  ;;  %v1523_v30 = vsub.f32 %v1515_v27, %v1512_v26  ;;  %v71_v3 = vmul.f32 %v1267_v1, %v1417_v35 }
 0x14c   :  { %1192 = vmatprep.subr.mxu1 %v1331_v5  ;;  %1162 = vmatpush3.msra.mxu0 %v116_v28 }
 0x14d   :  { %1193 = vmatpush3.msra.mxu1 %v134_v29  ;;  %1163 = vmatprep.subr.mxu0 %v1331_v5 }
 0x14e   :  { %1194 = vmatprep.subr.mxu1 %v1331_v5  ;;  %842 = vrot.lane.b32.xlu0 %v1523_v30, %s1336_s1 }
 0x14f   :  { %1195 = vmatpush3.msra.mxu1 %v133_v31  ;;  %1164 = vmatpush3.msra.mxu0 %v115_v32  ;;  %v1635_v32 = vld [vmem:[%s1843_s3 + $0xc] sm:$0xf] }
 0x150   :  { %440 = vperm.xlu1 %1237, %v1444_v51   ;;  %1165 = vmatprep.subr.mxu0 %v1331_v5 }
 0x151   :  { %1196 = vmatprep.subr.mxu1 %v1331_v5  ;;  %1166 = vmatpush3.msra.mxu0 %v114_v34 }
 0x152   :  { %1197 = vmatpush3.msra.mxu1 %v132_v36  ;;  %1167 = vmatprep.subr.mxu0 %v1331_v5 }
 0x153   :  { %1198 = vmatprep.subr.mxu1 %v1331_v5  ;;  %517 = vperm.xlu0 %1239, %v1436_v48  }
 0x154   :  { %1199 = vmatpush3.msra.mxu1 %v131_v37  ;;  %1168 = vmatpush3.msra.mxu0 %v113_v38 }
 0x155   :  { %1238 = vset.pattern.permute.xlu1 %v1337_v41  ;;  %1169 = vmatprep.subr.mxu0 %v1331_v5 }
 0x156   :  { %1200 = vmatprep.subr.mxu1 %v1331_v5  ;;  %473 = vperm.xlu1 %1238, %v1436_v48  }
 0x157   :  { %1170 = vmatpush3.msra.mxu0 %v112_v39  ;;  %1201 = vmatpush3.msra.mxu1 %v130_v40 }
 0x158   :  { %1171 = vmatprep.subr.mxu0 %v1331_v5  ;;  %1202 = vmatprep.subr.mxu1 %v1331_v5 }
 0x159   :  { %1203 = vmatpush3.msra.mxu1 %v129_v42  ;;  %529 = vperm.xlu0 %1239, %v1455_v58  }
 0x15a   :  { %1172 = vmatpush3.msra.mxu0 %v111_v43  ;;  %1204 = vmatprep.subr.mxu1 %v1331_v5 }
 0x15b   :  { %1173 = vmatprep.subr.mxu0 %v1331_v5  ;;  %481 = vperm.xlu1 %1238, %v1444_v51  }
 0x15c   :  { %1174 = vmatpush3.msra.mxu0 %v110_v45  ;;  %1205 = vmatpush3.msra.mxu1 %v128_v46  ;;  %v424_v45 = vld [vmem:[%s1843_s3] sm:$0xf] }
 0x15d   :  { %1175 = vmatprep.subr.mxu0 %v1331_v5  ;;  %1206 = vmatprep.subr.mxu1 %v1331_v5 }
 0x15e   :  { %1207 = vmatpush3.msra.mxu1 %v127_v47  ;;  %1241 = vset.pattern.permute.xlu0 %v1337_v41 }
 0x15f   :  { %1176 = vmatpush3.msra.mxu0 %v109_v49  ;;  %1208 = vmatprep.subr.mxu1 %v1331_v5 }
 0x160   :  { %477 = vperm.xlu0 %1241, %v1429_v44   ;;  %1177 = vmatprep.subr.mxu0 %v1331_v5 }
 0x161   :  { %485 = vperm.xlu1 %1238, %v1455_v58   ;;  %1178 = vmatpush3.msra.mxu0 %v108_v50 }
 0x162   :  { %1209 = vmatpush3.msra.mxu1 %v126_v52  ;;  %1179 = vmatprep.subr.mxu0 %v1331_v5 }
 0x163   :  { %1210 = vmatprep.subr.mxu1 %v1331_v5  ;;  %1180 = vmatpush3.msra.mxu0 %v107_v53 }
 0x164   :  { %1211 = vmatpush3.msra.mxu1 %v125_v54  ;;  %701 = vperm.xlu0 %1241, %v1483_v9  }
 0x165   :  { %1212 = vmatprep.subr.mxu1 %v1331_v5  ;;  %1181 = vmatprep.subr.mxu0 %v1331_v5 }
 0x166   :  { %1240 = vset.pattern.permute.xlu1 %v1335_v62  ;;  %1182 = vmatpush3.msra.mxu0 %v106_v55  ;;  %v70_v62 = vmul.f32 %v1265_v60, %v1411_v33  ;;  %v1338_v33 = vmov 3  }
 0x167   :  { %1213 = vmatpush3.msra.mxu1 %v124_v56  ;;  %521 = vperm.xlu1 %1240, %v1429_v44  }
 0x168   :  { %1183 = vmatprep.subr.mxu0 %v1331_v5  ;;  %1214 = vmatprep.subr.mxu1 %v1331_v5 }
 0x169   :  { %1184 = vmatpush3.msra.mxu0 %v105_v57  ;;  %1215 = vmatpush3.msra.mxu1 %v123_v59 }
 0x16a   :  { %1216 = vmatprep.subr.mxu1 %v1331_v5  ;;  %777 = vperm.xlu0 %1241, %v1486_v10  }
 0x16b   :  { %1185 = vmatprep.subr.mxu0 %v1331_v5  ;;  %1217 = vmatpush3.msra.mxu1 %v122_v61 }
 0x16c   :  { %1186 = vmatpush3.msra.mxu0 %v104_v63  ;;  %525 = vperm.xlu1 %1240, %v1444_v51  }
 0x16d   :  { %1188 = vmatmul.mubr.f32.vlgmr.msra.gmra.mxu0 %v70_v62  ;;  %1218 = vmatprep.subr.mxu1 %v1331_v5 }
 0x16e   :  { %1219 = vmatpush3.msra.mxu1 %v121_v0  ;;  %1247 = vset.pattern.permute.xlu0 %v1332_v18 }
 0x16f   :  { %1220 = vmatprep.subr.mxu1 %v1331_v5  ;;  %1222 = vmatprep.mubr.msk.f32.mxu1 %vm1334_vm0, %v1331_v5  ;;  %v1597_v5 = vpop.permute.xlu1 %435 }
 0x170   :  { %1221 = vmatpush3.msra.mxu1 %v120_v2  ;;  %430 = vperm.xlu0 %1247, %v1436_v48  }
 0x171   :  { %1242 = vset.pattern.permute.xlu1 %v1338_v33  ;;  %1223 = vmatmul.mubr.f32.vlgmr.msra.gmra.mxu1 %v71_v3 }
 0x172   :  { %561 = vperm.xlu1 %1242, %v1436_v48  }
 0x174   :  { %445 = vperm.xlu0 %1247, %v1455_v58  }
 0x176   :  { %1243 = vset.pattern.permute.xlu1 %v1332_v18 }
 0x177   :  { %658 = vperm.xlu1 %1243, %v1473_v4  }
 0x178   :  { %668 = vperm.xlu0 %1247, %v1496_v16  }
 0x17b   :  { %663 = vperm.xlu1 %1243, %v1483_v9  }
 0x17c   :  { %734 = vperm.xlu0 %1247, %v1476_v6  }
 0x17f   :  { %673 = vperm.xlu1 %1243, %v1512_v26  }
 0x180   :  { %749 = vperm.xlu0 %1247, %v1515_v27  }
 0x183   :  { %1244 = vset.pattern.permute.xlu1 %v1337_v41 }
 0x184   :  { %697 = vperm.xlu1 %1244, %v1473_v4  }
 0x188   :  { %705 = vperm.xlu1 %1244, %v1496_v16  }
 0x18c   :  { %709 = vperm.xlu1 %1244, %v1512_v26  }
 0x190   :  { %1245 = vset.pattern.permute.xlu1 %v1332_v18 }
 0x191   :  { %739 = vperm.xlu1 %1245, %v1486_v10  }
 0x195   :  { %744 = vperm.xlu1 %1245, %v1499_v17  }
 0x199   :  { %1246 = vset.pattern.permute.xlu1 %v1337_v41 }
 0x19a   :  { %773 = vperm.xlu1 %1246, %v1476_v6  }
 0x19e   :  { %781 = vperm.xlu1 %1246, %v1499_v17  }
 0x1a2   :  { %785 = vperm.xlu1 %1246, %v1515_v27  }
 0x1a6   :  { %1248 = vset.pattern.permute.xlu1 %v1332_v18 }
 0x1b3   :  { %v837_v35 = vpop.permute.xlu1 %836 }
 0x1b4   :  { %v848_v48 = vmul.f32 %v837_v35, %v1480_v7  ;;  %v449_v7 = vshrl.u32 %v448_v13, 7 }
 0x1b6   :  { %874 = vperm.xlu0 %1247, %v848_v48   ;;  %v1611_v15 = vsub.s32 0, %v449_v7  ;;  %v1613_v16 = vsub.s32 1, %v449_v7  ;;  %v1651_v56 = vsub.s32 3, %v449_v7 }
 0x1b7   :  { %v839_v4 = vpop.permute.xlu0 %838 }
 0x1b8   :  { %v849_v8 = vmul.f32 %v839_v4, %v1492_v12  ;;  %v1609_v12 = vld [vmem:[%s1843_s3 + $0x8] sm:$0xf]  ;;  %v503_v36 = vrot.slane %v1635_v32, %v1613_v16  ;;  %v463_v43 = vrot.slane %v1635_v32, %v1611_v15  ;;  %v491_v47 = vrot.slane %v424_v45, %v1613_v16 }
 0x1b9   :  { %v499_v19 = vrot.slane %v1609_v12, %v1613_v16  ;;  %v451_v50 = vrot.slane %v424_v45, %v1611_v15  ;;  %v579_v0 = vrot.slane %v424_v45, %v1651_v56 }
 0x1ba   :  { %879 = vperm.xlu1 %1248, %v849_v8  }
 0x1bd   :  { %v841_v9 = vpop.permute.xlu1 %840 }
 0x1be   :  { %v850_v10 = vmul.f32 %v841_v9, %v1509_v24 }
 0x1c0   :  { %884 = vperm.xlu1 %1248, %v850_v10   ;;  %v843_v6 = vpop.permute.xlu0 %842 }
 0x1c1   :  { %v851_v11 = vmul.f32 %v843_v6, %v1523_v30 }
 0x1c3   :  { %889 = vperm.xlu0 %1247, %v851_v11  }
 0x1c4   :  { %1250 = vset.pattern.permute.xlu1 %v1338_v33 }
 0x1c5   :  { %569 = vperm.xlu1 %1250, %v1444_v51   ;;  %v459_v51 = vrot.slane %v1609_v12, %v1611_v15 }
 0x1c7   :  { %1249 = vset.pattern.permute.xlu0 %v1338_v33 }
 0x1c8   :  { %565 = vperm.xlu0 %1249, %v1429_v44  }
 0x1cb   :  { %v441_v14 = vpop.permute.xlu1 %440 }
 0x1cc   :  { %573 = vperm.xlu0 %1249, %v1455_v58   ;;  %v466_v58 = vsub.f32 %v441_v14, %v459_v51 }
 0x1ce   :  { %v518_v17 = vpop.permute.xlu0 %517  ;;  %v470_v23 = vand.u32 2147483647, %v466_v58 }
 0x1d0   :  { %1251 = vset.pattern.permute.xlu0 %v1332_v18  ;;  %v1624_v18 = vsub.s32 2, %v449_v7 }
 0x1d1   :  { %v474_v44 = vpop.permute.xlu1 %473 }
 0x1d2   :  { %v543_v30 = vrot.slane %v1609_v12, %v1624_v18  ;;  %v547_v38 = vrot.slane %v1635_v32, %v1624_v18  ;;  %v535_v55 = vrot.slane %v424_v45, %v1624_v18  ;;  %v504_v57 = vsub.f32 %v474_v44, %v491_v47 }
 0x1d4   :  { %v530_v20 = vpop.permute.xlu0 %529  ;;  %v508_v1 = vand.u32 2147483647, %v504_v57  ;;  %v548_v2 = vsub.f32 %v518_v17, %v535_v55 }
 0x1d5   :  { %v551_v49 = vsub.f32 %v530_v20, %v547_v38 }
 0x1d6   :  { %v482_v21 = vpop.permute.xlu1 %481  ;;  %v552_v48 = vand.u32 2147483647, %v548_v2 }
 0x1d7   :  { %v506_v22 = vsub.f32 %v482_v21, %v499_v19  ;;  %v555_v59 = vand.u32 2147483647, %v551_v49 }
 0x1d9   :  { %v510_v24 = vand.u32 2147483647, %v506_v22  ;;  %v1675_v22 = vld [vmem:[%s1843_s3 + $0x4] sm:$0xf]  ;;  %s1339_s3 = smov [#allocation5]  }
 0x1da   :  { %s1005_s21 = sshll.u32 %s1339_s3, 4  ;;  %s1006_s21 = int_to_ptr.vmem [resolvable:$true] %s1005_s21 }
 0x1db   :  { %v514_v25 = vadd.f32 %v510_v24, %v470_v23  ;;  %v1620_v26 = vpop.permute.xlu0 %477  ;;  %v632_v23 = vmul.f32 0.5, %v424_v45  ;;  %v633_v24 = vmul.f32 0.5, %v1675_v22  ;;  %s1304_s22 = scalar_lea.vmem %s1006_s21, 512  ;;  %p1309_p6 = scmp.lt.s32.totalorder %s1006_s21, %s1006_s21 }
 0x1dc   :  { %v486_v27 = vpop.permute.xlu1 %485  ;;  %p1305_p5 = scmp.ne.s32.totalorder %s1006_s21, %s1304_s22  ;;  %p1310_p7 = scmp.lt.s32.totalorder %s1304_s22, %s1304_s22 }
 0x1dd   :  { %v507_v41 = vsub.f32 %v486_v27, %v503_v36  ;;  %v641_v36 = vrot.slane %v633_v24, 2 }
 0x1de   :  { %p1311_p8 = por %p1310_p7, %p1309_p6 }
 0x1df   :  { %v1622_v28 = vpop.permute.xlu0 %701  ;;  %v511_v53 = vand.u32 2147483647, %v507_v41 }
 0x1e0   :  { %p1312_p9 = pnand %p1311_p8, %p1305_p5 }
 0x1e2   :  { %v1626_v29 = vpop.permute.xlu1 %521 }
 0x1e5   :  { %v1630_v31 = vpop.permute.xlu0 %777 }
 0x1e7   :  { %v526_v34 = vpop.permute.xlu1 %525 }
 0x1e8   :  { %v550_v37 = vsub.f32 %v526_v34, %v543_v30  ;;  %v635_v30 = vmul.f32 0.5, %v1635_v32  ;;  %v640_v34 = vrot.slane %v632_v23, 2 }
 0x1ea   :  { %v554_v39 = vand.u32 2147483647, %v550_v37  ;;  %v643_v38 = vrot.slane %v635_v30, 2 }
 0x1eb   :  { %v431_v40 = vpop.permute.xlu0 %430 }
 0x1ec   :  { %v1641_v42 = vadd.f32 %v554_v39, %v514_v25  ;;  %v464_v60 = vsub.f32 %v431_v40, %v451_v50  ;;  %v634_v25 = vmul.f32 0.5, %v1609_v12  ;;  %v648_v39 = vsub.f32 %v424_v45, %v640_v34 }
 0x1ed   :  { %v562_v46 = vpop.permute.xlu1 %561  ;;  %v652_v40 = vadd.f32 %v640_v34, %v424_v45  ;;  %v655_v57 = vadd.f32 %v643_v38, %v1635_v32 }
 0x1ee   :  { %v468_v3 = vand.u32 2147483647, %v464_v60  ;;  %v592_v8 = vsub.f32 %v562_v46, %v579_v0  ;;  %v642_v37 = vrot.slane %v634_v25, 2  ;;  %v653_v46 = vadd.f32 %v641_v36, %v1675_v22 }
 0x1ef   :  { %v446_v52 = vpop.permute.xlu0 %445  ;;  %v755_v2 = vrot.slane %v652_v40, %v1611_v15 }
 0x1f0   :  { %v467_v54 = vsub.f32 %v446_v52, %v463_v43  ;;  %v512_v4 = vadd.f32 %v508_v1, %v468_v3  ;;  %v596_v10 = vand.u32 2147483647, %v592_v8  ;;  %v649_v43 = vsub.f32 %v1675_v22, %v641_v36 }
 0x1f1   :  { %v650_v47 = vsub.f32 %v1609_v12, %v642_v37  ;;  %v654_v49 = vadd.f32 %v642_v37, %v1609_v12  ;;  %v852_v52 = vsub.f32 %v652_v40, %v648_v39  ;;  %v795_v60 = vrot.slane %v653_v46, %v1613_v16 }
 0x1f2   :  { %v471_v61 = vand.u32 2147483647, %v467_v54  ;;  %v1653_v63 = vpop.permute.xlu1 %658  ;;  %v556_v9 = vadd.f32 %v552_v48, %v512_v4  ;;  %v853_v54 = vsub.f32 %v653_v46, %v649_v43  ;;  %v683_v1 = vrot.slane %v649_v43, %v1611_v15 }
 0x1f3   :  { %v1688_v50 = vpop.permute.xlu0 %668  ;;  %v854_v55 = vsub.f32 %v654_v49, %v650_v47  ;;  %v1699_v0 = vrot.slane %v650_v47, %v1611_v15  ;;  %v860_v48 = vrot.slane %v852_v52, 1  ;;  %v715_v8 = vrot.slane %v648_v39, %v1613_v16 }
 0x1f4   :  { %v515_v62 = vadd.f32 %v511_v53, %v471_v61  ;;  %v600_v11 = vadd.f32 %v596_v10, %v556_v9  ;;  %v651_v53 = vsub.f32 %v1635_v32, %v643_v38  ;;  %v679_v61 = vrot.slane %v648_v39, %v1611_v15 }
 0x1f5   :  { %v861_v9 = vrot.slane %v853_v54, 1  ;;  %v862_v10 = vrot.slane %v854_v55, 1  ;;  %v1718_v23 = vrot.slane %v654_v49, %v1611_v15  ;;  %v1721_v25 = vrot.slane %v654_v49, %v1613_v16 }
 0x1f6   :  { %v1656_v33 = vadd.f32 %v555_v59, %v515_v62  ;;  %v1658_v35 = vpop.permute.xlu1 %663  ;;  %v976_v14 = vmul.f32 5.0, %v600_v11  ;;  %v719_v59 = vrot.slane %v649_v43, %v1613_v16  ;;  %v791_v62 = vrot.slane %v652_v40, %v1613_v16 }
 0x1f7   :  { %v1704_v4 = vrot.slane %v651_v53, %v1611_v15  ;;  %v735_v11 = vpop.permute.xlu0 %734  ;;  %v805_v30 = vmin.f32 %v1630_v31, %v795_v60  ;;  %v1725_v36 = vrot.slane %v655_v57, %v1613_v16  ;;  %v868_v37 = vmul.f32 %v860_v48, %v852_v52 }
 0x1f8   :  { %1845 = vst [vmem:[#allocation8_spill] sm:$0xff] %v1656_v33  ;;  %v768_v38 = vmin.f32 %v735_v11, %v755_v2  ;;  %v1728_v40 = vmul.f32 %v861_v9, %v853_v54  ;;  %v1730_v43 = vmul.f32 %v862_v10, %v854_v55  ;;  %v941_v45 = vmax.f32 %v1630_v31, %v795_v60 }
 0x1f9   :  { %v928_v54 = vmin.f32 %v1653_v63, %v679_v61  ;;  %v933_v10 = vmin.f32 %v1622_v28, %v719_v59  ;;  %v929_v31 = vmin.f32 %v1658_v35, %v683_v1 }
 0x1fa   :  { %v1660_v6 = vpop.permute.xlu1 %673 }
 0x1ff   :  { %v1662_v13 = vpop.permute.xlu1 %697 }
 0x200   :  { %v728_v39 = vmax.f32 %v1662_v13, %v715_v8  ;;  %v932_v49 = vmin.f32 %v1662_v13, %v715_v8  ;;  %v895_v8 = vrot.slane %v868_v37, %v1611_v15  ;;  %v930_v37 = vmin.f32 %v1688_v50, %v1699_v0 }
 0x203   :  { %v1668_v58 = vpop.permute.xlu1 %705 }
 0x205   :  { %v202_v7 = vpop.f32.mrf.mxu0 }
 0x206   :  { %v416_v51 = vsub.f32 0.0, %v202_v7  ;;  %v1708_v7 = vrot.slane %v655_v57, %v1611_v15 }
 0x207   :  { %v1119_v44 = vpop.f32.mrf.mxu0  ;;  %v1670_v21 = vpop.permute.xlu1 %709 }
 0x208   :  { %v1664_v17 = vadd.f32 %v976_v14, %v416_v51  ;;  %v1711_v14 = vrot.slane %v650_v47, %v1613_v16  ;;  %v1714_v51 = vrot.slane %v651_v53, %v1613_v16  ;;  %v855_v44 = vsub.f32 %v655_v57, %v651_v53 }
 0x209   :  { %v1666_v19 = vpop.f32.mrf.mxu1  ;;  %v936_v47 = vmax.f32 %v735_v11, %v755_v2  ;;  %v693_v2 = vmax.f32 %v1658_v35, %v683_v1  ;;  %v750_v11 = vpop.permute.xlu0 %749 }
 0x20a   :  { %v863_v53 = vrot.slane %v855_v44, 1 }
 0x20b   :  { %v1154_v20 = vpop.f32.mrf.mxu1  ;;  %v944_v60 = vsub.f32 %v936_v47, %v928_v54  ;;  %v934_v47 = vmin.f32 %v1668_v58, %v1711_v14 }
 0x20c   :  { %v1679_v27 = vpop.permute.xlu1 %739  ;;  %v759_v20 = vrot.slane %v653_v46, %v1611_v15  ;;  %v729_v46 = vmax.f32 %v1622_v28, %v719_v59  ;;  %v1749_v59 = vmul.f32 %v863_v53, %v855_v44  ;;  %v931_v44 = vmin.f32 %v1660_v6, %v1704_v4 }
 0x20e   :  { %v769_v57 = vmin.f32 %v1679_v27, %v759_v20  ;;  %v817_v48 = vsub.f32 %v805_v30, %v729_v46  ;;  %v937_v55 = vmax.f32 %v1679_v27, %v759_v20  ;;  %v949_v27 = vsub.f32 %v941_v45, %v933_v10 }
 0x20f   :  { %v694_v30 = vmax.f32 %v1688_v50, %v1699_v0  ;;  %v730_v46 = vmax.f32 %v1668_v58, %v1711_v14  ;;  %v731_v10 = vmax.f32 %v1670_v21, %v1714_v51 }
 0x210   :  { %v1682_v41 = vpop.permute.xlu1 %744  ;;  %v821_v20 = vmax.f32 %v817_v48, 0.0  ;;  %v945_v35 = vsub.f32 %v937_v55, %v929_v31 }
 0x212   :  { %v1773_v48 = vmul.f32 %v949_v27, %v945_v35 }
 0x215   :  { %v774_v3 = vpop.permute.xlu1 %773 }
 0x216   :  { %v804_v24 = vmin.f32 %v774_v3, %v791_v62  ;;  %v940_v34 = vmax.f32 %v774_v3, %v791_v62  ;;  %v692_v62 = vmax.f32 %v1653_v63, %v679_v61  ;;  %v903_v63 = vrot.slane %v1730_v43, %v1611_v15 }
 0x217   :  { %v809_v61 = vsub.f32 %v769_v57, %v693_v2 }
 0x218   :  { %v816_v52 = vsub.f32 %v804_v24, %v728_v39  ;;  %v948_v9 = vsub.f32 %v940_v34, %v932_v49  ;;  %v808_v13 = vsub.f32 %v768_v38, %v692_v62  ;;  %v899_v24 = vrot.slane %v1728_v40, %v1611_v15 }
 0x219   :  { %v782_v3 = vpop.permute.xlu1 %781  ;;  %v695_v39 = vmax.f32 %v1660_v6, %v1704_v4  ;;  %v813_v0 = vmax.f32 %v809_v61, 0.0  ;;  %v770_v62 = vmin.f32 %v1682_v41, %v1718_v23  ;;  %v938_v6 = vmax.f32 %v1682_v41, %v1718_v23 }
 0x21a   :  { %v820_v28 = vmax.f32 %v816_v52, 0.0  ;;  %v1753_v1 = vmul.f32 %v948_v9, %v944_v60  ;;  %v812_v38 = vmax.f32 %v808_v13, 0.0  ;;  %v806_v45 = vmin.f32 %v782_v3, %v1721_v25 }
 0x21b   :  { %v942_v49 = vmax.f32 %v782_v3, %v1721_v25  ;;  %v771_v25 = vmin.f32 %v750_v11, %v1708_v7  ;;  %v939_v9 = vmax.f32 %v750_v11, %v1708_v7  ;;  %v935_v41 = vmin.f32 %v1670_v21, %v1714_v51 }
 0x21c   :  { %v1771_v57 = vmul.f32 %v820_v28, %v812_v38  ;;  %v960_v4 = vmax.f32 %v1753_v1, 1e-09  ;;  %v818_v3 = vsub.f32 %v806_v45, %v730_v46  ;;  %v810_v13 = vsub.f32 %v770_v62, %v694_v30 }
 0x21d   :  { %v786_v40 = vpop.permute.xlu1 %785  ;;  %v950_v23 = vsub.f32 %v942_v49, %v934_v47  ;;  %v1790_v31 = vmul.f32 %v821_v20, %v813_v0  ;;  %v946_v27 = vsub.f32 %v938_v6, %v930_v37  ;;  %v455_v21 = vrot.slane %v1675_v22, %v1611_v15 }
 0x21e   :  { %v807_v58 = vmin.f32 %v786_v40, %v1725_v36  ;;  %v943_v54 = vmax.f32 %v786_v40, %v1725_v36  ;;  %v961_v36 = vmax.f32 %v1773_v48, 1e-09  ;;  %1268 = vrcp.f32 %v960_v4 }
 0x21f   :  { %v822_v7 = vmax.f32 %v818_v3, 0.0  ;;  %v539_v51 = vrot.slane %v1675_v22, %v1624_v18  ;;  %v811_v30 = vsub.f32 %v771_v25, %v695_v39  ;;  %v1798_v20 = vmul.f32 %v950_v23, %v946_v27 }
 0x220   :  { %v819_v61 = vsub.f32 %v807_v58, %v731_v10  ;;  %v951_v11 = vsub.f32 %v943_v54, %v935_v41  ;;  %v814_v35 = vmax.f32 %v810_v13, 0.0  ;;  %v1846_v37 = vrot.slane %v1675_v22, %v1613_v16 }
 0x221   :  { %v907_v46 = vrot.slane %v1749_v59, %v1611_v15  ;;  %v549_v16 = vsub.f32 %v1626_v29, %v539_v51  ;;  %v815_v49 = vmax.f32 %v811_v30, 0.0  ;;  %v583_v58 = vrot.slane %v1675_v22, %v1651_v56 }
 0x222   :  { %v505_v38 = vsub.f32 %v1620_v26, %v1846_v37  ;;  %v823_v45 = vmax.f32 %v819_v61, 0.0  ;;  %v826_v18 = vmul.f32 %v822_v7, %v814_v35  ;;  %v962_v26 = vmax.f32 %v1798_v20, 1e-09 }
 0x223   :  { %v553_v43 = vand.u32 2147483647, %v549_v16  ;;  %v417_v7 = vsub.f32 0.0, %v1666_v19  ;;  %v1847_v16 = vld [vmem:[#allocation8_spill] sm:$0xff] }
 0x224   :  { %v509_v62 = vand.u32 2147483647, %v505_v38 }
 0x22d   :  { %v1743_v33 = vpop.f32.mrf.mxu0 }
 0x22f   :  { %v1189_v34 = vpop.f32.mrf.mxu0 }
 0x231   :  { %v1767_v53 = vpop.f32.mrf.mxu1  ;;  %v875_v50 = vpop.permute.xlu0 %874 }
 0x232   :  { %v908_v52 = vadd.f32 %v895_v8, %v875_v50 }
 0x233   :  { %v1224_v14 = vpop.f32.mrf.mxu1 }
 0x234   :  { %v1782_v55 = vsub.f32 %v908_v52, %v1771_v57  ;;  %v827_v52 = vmul.f32 %v823_v45, %v815_v49 }
 0x235   :  { %v880_v2 = vpop.permute.xlu1 %879 }
 0x236   :  { %v916_v8 = vmax.f32 %v1782_v55, 1e-09  ;;  %v909_v60 = vadd.f32 %v899_v24, %v880_v2  ;;  %v947_v24 = vsub.f32 %v939_v9, %v931_v44  ;;  %v465_v44 = vsub.f32 %v1597_v5, %v455_v21  ;;  %v1269_v9 = vpop.eup %1268 }
 0x237   :  { %v956_v29 = vsub.f32 %v1753_v1, %v1782_v55  ;;  %v591_v2 = vrot.slane %v1635_v32, %v1651_v56 }
 0x238   :  { %1270 = vrcp.f32 %v916_v8  ;;  %v913_v28 = vsub.f32 %v909_v60, %v1790_v31  ;;  %v1806_v47 = vmul.f32 %v951_v11, %v947_v24  ;;  %v469_v15 = vand.u32 2147483647, %v465_v44 }
 0x239   :  { %1272 = vrcp.f32 %v961_v36  ;;  %v968_v55 = vmul.f32 %v1269_v9, %v956_v29 }
 0x23a   :  { %v917_v34 = vmax.f32 %v913_v28, 1e-09  ;;  %v963_v6 = vmax.f32 %v1806_v47, 1e-09  ;;  %v513_v14 = vadd.f32 %v509_v62, %v469_v15  ;;  %v957_v23 = vsub.f32 %v1773_v48, %v913_v28 }
 0x23b   :  { %v885_v40 = vpop.permute.xlu1 %884 }
 0x23c   :  { %1274 = vrcp.f32 %v917_v34  ;;  %v910_v39 = vadd.f32 %v903_v63, %v885_v40  ;;  %v587_v63 = vrot.slane %v1609_v12, %v1651_v56  ;;  %v557_v22 = vadd.f32 %v553_v43, %v513_v14 }
 0x23d   :  { %1276 = vrcp.f32 %v962_v26 }
 0x23e   :  { %v914_v50 = vsub.f32 %v910_v39, %v826_v18  ;;  %v890_v0 = vpop.permute.xlu0 %889 }
 0x23f   :  { %v911_v59 = vadd.f32 %v907_v46, %v890_v0 }
 0x240   :  { %v918_v4 = vmax.f32 %v914_v50, 1e-09  ;;  %v570_v3 = vpop.permute.xlu1 %569 }
 0x241   :  { %v915_v5 = vsub.f32 %v911_v59, %v827_v52  ;;  %v594_v13 = vsub.f32 %v570_v3, %v587_v63 }
 0x242   :  { %1278 = vrcp.f32 %v918_v4 }
 0x243   :  { %v919_v25 = vmax.f32 %v915_v5, 1e-09  ;;  %v566_v54 = vpop.permute.xlu0 %565  ;;  %1280 = vrcp.f32 %v963_v6  ;;  %v598_v28 = vand.u32 2147483647, %v594_v13  ;;  %v959_v40 = vsub.f32 %v1806_v47, %v915_v5 }
 0x244   :  { %v593_v10 = vsub.f32 %v566_v54, %v583_v58  ;;  %v419_v58 = vsub.f32 0.0, %v1767_v53 }
 0x245   :  { %v1271_v41 = vpop.eup %1270  ;;  %1282 = vrcp.f32 %v919_v25  ;;  %v602_v38 = vadd.f32 %v598_v28, %v1641_v42  ;;  %v418_v42 = vsub.f32 0.0, %v1743_v33 }
 0x246   :  { %v924_v1 = vmul.f32 %v1271_v41, %v1771_v57  ;;  %v597_v12 = vand.u32 2147483647, %v593_v10  ;;  %v1273_v60 = vpop.eup %1272  ;;  %v958_v57 = vsub.f32 %v1798_v20, %v914_v50 }
 0x247   :  { %v574_v8 = vpop.permute.xlu0 %573  ;;  %v969_v11 = vmul.f32 %v1273_v60, %v957_v23  ;;  %v978_v50 = vmul.f32 5.0, %v602_v38 }
 0x248   :  { %v972_v36 = vsub.f32 %v924_v1, %v968_v55  ;;  %v601_v27 = vadd.f32 %v597_v12, %v557_v22  ;;  %v595_v21 = vsub.f32 %v574_v8, %v591_v2 }
 0x249   :  { %v1275_v61 = vpop.eup %1274  ;;  %v982_v47 = vadd.f32 %v978_v50, %v418_v42 }
 0x24a   :  { %v984_v51 = vsub.f32 0.0, %v972_v36  ;;  %v925_v48 = vmul.f32 %v1275_v61, %v1790_v31  ;;  %v977_v30 = vmul.f32 5.0, %v601_v27  ;;  %v599_v35 = vand.u32 2147483647, %v595_v21  ;;  %v1277_v34 = vpop.eup %1276 }
 0x24b   :  { %v970_v39 = vmul.f32 %v1277_v34, %v958_v57 }
 0x24c   :  { %v988_v32 = vmul.f32 2.0, %v984_v51  ;;  %v973_v56 = vsub.f32 %v925_v48, %v969_v11  ;;  %v981_v24 = vadd.f32 %v977_v30, %v417_v7  ;;  %v603_v49 = vadd.f32 %v599_v35, %v1847_v16 }
 0x24e   :  { %v985_v37 = vsub.f32 0.0, %v973_v56  ;;  %v992_v45 = vadd.f32 %v988_v32, %v1664_v17  ;;  %v979_v4 = vmul.f32 5.0, %v603_v49 }
 0x24f   :  { %v1279_v19 = vpop.eup %1278 }
 0x250   :  { %v926_v46 = vmul.f32 %v1279_v19, %v826_v18  ;;  %v989_v31 = vmul.f32 2.0, %v985_v37  ;;  %996 = vst [vmem:[#allocation5] sm:$0xff] %v992_v45  ;;  %v1281_v44 = vpop.eup %1280  ;;  %v983_v29 = vadd.f32 %v979_v4, %v419_v58 }
 0x251   :  { %v971_v59 = vmul.f32 %v1281_v44, %v959_v40 }
 0x252   :  { %v1283_v26 = vpop.eup %1282  ;;  %v974_v20 = vsub.f32 %v926_v46, %v970_v39  ;;  %v993_v0 = vadd.f32 %v989_v31, %v981_v24 }
 0x253   :  { %v927_v62 = vmul.f32 %v1283_v26, %v827_v52 }
 0x254   :  { %v986_v6 = vsub.f32 0.0, %v974_v20  ;;  %997 = vst [vmem:[#allocation5 + $0x8] sm:$0xff] %v993_v0 }
 0x255   :  { %v975_v17 = vsub.f32 %v927_v62, %v971_v59 }
 0x256   :  { %v990_v18 = vmul.f32 2.0, %v986_v6 }
 0x257   :  { %v987_v15 = vsub.f32 0.0, %v975_v17 }
 0x258   :  { %v994_v43 = vadd.f32 %v990_v18, %v982_v47 }
 0x259   :  { %v991_v5 = vmul.f32 2.0, %v987_v15 }
 0x25a   :  { %998 = vst [vmem:[#allocation5 + $0x10] sm:$0xff] %v994_v43 }
 0x25b   :  { %v995_v63 = vadd.f32 %v991_v5, %v983_v29 }
 0x25d   :  { %999 = vst [vmem:[#allocation5 + $0x18] sm:$0xff] %v995_v63 }
 0x25e   :  { %1315 = shalt.err (!%p1312_p9)
}
 0x25f   :  { %1011 = dma.vmem_to_hbm [thread:$0]  %s1006_s21, 512, %s1844_s4, [#allocation4], %s1329_s18, %s1329_s18, %s1330_s19  }
 0x260   :  { %1326 = dma.done.wait [#allocation4], 512  }
 0x261   :  { %1327 = vsyncadd [#allocation4], 4294966784 }
 0x262   :  { %1015 = vsyncpa [#allocation3], 1 }
 0x263   :  { %1016 = vsyncpa [#allocation4], 1 }

</bundles_post_ra>
